<compile_context>
chip_gen: v7x
topology: tpu7x:2x2x1
jax: 0.10.0
libtpu: 0.0.40
codegen_flags: <defaults>
</compile_context>

<pallas_src>
import functools

import jax
import jax.numpy as jnp
from jax.experimental import pallas as pl
from jax.experimental.pallas import tpu as pltpu


# ----------------------------------------------------------------------------
# Tiling helpers
# ----------------------------------------------------------------------------

_TM_TARGET = 256       # matmul rows per tile
_TN_TARGET = 256       # matmul output cols per tile (multiple of 128)
_TK_TARGET = 256       # matmul reduction depth per tile (multiple of 128)
_LN_ROWS_TARGET = 256  # layer-norm rows per tile


def _pick_tile(dim, target, align):
    """Largest tile <= target that is align-aligned and divides dim exactly.

    Falls back to the full dimension, which is always a legal block size."""
    if dim <= target:
        return dim
    t = (target // align) * align
    while t >= align:
        if dim % t == 0:
            return t
        t -= align
    return dim


# ----------------------------------------------------------------------------
# Tiled linear:  x (M,K) @ w_t (K,N)  [+ bias] [ReLU] [+ residual]
# ----------------------------------------------------------------------------

def _linear_kernel(*refs, relu, has_bias, has_res):
    x_ref, w_ref = refs[0], refs[1]
    idx = 2
    b_ref = None
    r_ref = None
    if has_bias:
        b_ref = refs[idx]
        idx += 1
    if has_res:
        r_ref = refs[idx]
        idx += 1
    o_ref, acc_ref = refs[idx], refs[idx + 1]

    k = pl.program_id(2)

    @pl.when(k == 0)
    def _():
        acc_ref[...] = jnp.zeros_like(acc_ref)

    acc_ref[...] += jnp.dot(x_ref[...], w_ref[...],
                            preferred_element_type=jnp.float32)

    @pl.when(k == pl.num_programs(2) - 1)
    def _():
        acc = acc_ref[...]
        if has_bias:
            acc = acc + b_ref[...].astype(jnp.float32)
        if relu:
            acc = jnp.maximum(acc, 0.0)
        if has_res:
            acc = acc + r_ref[...].astype(jnp.float32)
        o_ref[...] = acc.astype(o_ref.dtype)


def linear(x2d, w_t, b=None, *, relu=False, residual=None):
    """x2d: (M, K), w_t: (K, N) pre-transposed weight, b: (N,) or None,
    residual: (M, N) or None (added after bias/ReLU, matching the reference)."""
    M, K = x2d.shape
    K2, N = w_t.shape
    assert K == K2

    tm = _pick_tile(M, _TM_TARGET, 8)
    tn = _pick_tile(N, _TN_TARGET, 128)
    tk = _pick_tile(K, _TK_TARGET, 128)
    grid = (M // tm, N // tn, K // tk)

    in_specs = [
        pl.BlockSpec((tm, tk), lambda i, j, k: (i, k)),
        pl.BlockSpec((tk, tn), lambda i, j, k: (k, j)),
    ]
    args = [x2d, w_t]
    if b is not None:
        in_specs.append(pl.BlockSpec((1, tn), lambda i, j, k: (0, j)))
        args.append(b.reshape(1, N))
    if residual is not None:
        in_specs.append(pl.BlockSpec((tm, tn), lambda i, j, k: (i, j)))
        args.append(residual)

    kernel = functools.partial(_linear_kernel, relu=relu,
                               has_bias=b is not None,
                               has_res=residual is not None)
    return pl.pallas_call(
        kernel,
        out_shape=jax.ShapeDtypeStruct((M, N), x2d.dtype),
        grid_spec=pltpu.PrefetchScalarGridSpec(
            num_scalar_prefetch=0,
            grid=grid,
            in_specs=in_specs,
            out_specs=pl.BlockSpec((tm, tn), lambda i, j, k: (i, j)),
            scratch_shapes=[pltpu.VMEM((tm, tn), jnp.float32)],
        ),
        compiler_params=pltpu.CompilerParams(
            dimension_semantics=("parallel", "parallel", "arbitrary")),
    )(*args)


# ----------------------------------------------------------------------------
# LayerNorm (row-tiled); supports one or two consecutive LayerNorms per call
# ----------------------------------------------------------------------------

def _ln_kernel(*refs, eps, n_ln):
    x_ref = refs[0]
    o_ref = refs[-1]
    x = x_ref[...].astype(jnp.float32)
    for t in range(n_ln):
        g = refs[1 + 2 * t][...].astype(jnp.float32)
        b = refs[2 + 2 * t][...].astype(jnp.float32)
        mean = jnp.mean(x, axis=-1, keepdims=True)
        var = jnp.mean(jnp.square(x - mean), axis=-1, keepdims=True)
        x = (x - mean) * jax.lax.rsqrt(var + eps) * g + b
    o_ref[...] = x.astype(o_ref.dtype)


def layernorm(x3d, *gammas_betas, eps=1e-5):
    """LayerNorm over last dim of (B, T, C).  Pass (g1, b1) for a single LN or
    (g1, b1, g2, b2) to apply two back-to-back LNs fused in one kernel."""
    assert len(gammas_betas) % 2 == 0 and len(gammas_betas) >= 2
    n_ln = len(gammas_betas) // 2
    B, T, C = x3d.shape
    M = B * T
    x2d = x3d.reshape(M, C)

    tm = _pick_tile(M, _LN_ROWS_TARGET, 8)
    grid = (M // tm,)

    in_specs = [pl.BlockSpec((tm, C), lambda i: (i, 0))]
    args = [x2d]
    for gb in gammas_betas:
        in_specs.append(pl.BlockSpec((1, C), lambda i: (0, 0)))
        args.append(gb.reshape(1, C))

    kernel = functools.partial(_ln_kernel, eps=eps, n_ln=n_ln)
    out = pl.pallas_call(
        kernel,
        out_shape=jax.ShapeDtypeStruct((M, C), x3d.dtype),
        grid=grid,
        in_specs=in_specs,
        out_specs=pl.BlockSpec((tm, C), lambda i: (i, 0)),
        compiler_params=pltpu.CompilerParams(dimension_semantics=("parallel",)),
    )(*args)
    return out.reshape(B, T, C)


# ----------------------------------------------------------------------------
# Causal multi-head attention.  One grid step per batch row; all heads are
# processed inside the kernel so the output block is the lane-dense (T, C)
# slab (no wrapper-side head transposes, no (B*H, T, hs) reshuffles).
# ----------------------------------------------------------------------------

def _attention_kernel(qkv_ref, o_ref, *, num_heads, scale):
    qkv = qkv_ref[0].astype(jnp.float32)              # (T, 3C), head-major cols
    T = qkv.shape[0]
    C = qkv.shape[1] // 3
    hs = C // num_heads

    row = jax.lax.broadcasted_iota(jnp.int32, (T, T), 0)
    col = jax.lax.broadcasted_iota(jnp.int32, (T, T), 1)
    causal = col <= row

    outs = []
    for h in range(num_heads):
        q = qkv[:, h * hs:(h + 1) * hs]
        k = qkv[:, C + h * hs:C + (h + 1) * hs]
        v = qkv[:, 2 * C + h * hs:2 * C + (h + 1) * hs]
        # s = q @ k^T * scale  (scale = n_embed ** -0.5, as in the reference)
        s = jax.lax.dot_general(q, k, (((1,), (1,)), ((), ())),
                                preferred_element_type=jnp.float32) * scale
        s = jnp.where(causal, s, -jnp.inf)
        m = jnp.max(s, axis=-1, keepdims=True)
        e = jnp.exp(s - m)
        denom = jnp.sum(e, axis=-1, keepdims=True)
        p = e * pl.reciprocal(denom, approx=True)     # divide on the EUP slot
        outs.append(jnp.dot(p, v, preferred_element_type=jnp.float32))

    o_ref[...] = jnp.concatenate(outs, axis=-1)[None].astype(o_ref.dtype)
    # TODO(synk): for long context lengths, switch to a flash-style KV-tiled
    # online-softmax loop instead of materializing the (T, T) score matrix.


def causal_attention(qkv, num_heads, scale):
    """qkv: (B, T, 3C) packed [Q | K | V], head-major within each C chunk."""
    B, T, C3 = qkv.shape
    C = C3 // 3
    kernel = functools.partial(_attention_kernel, num_heads=num_heads,
                               scale=scale)
    return pl.pallas_call(
        kernel,
        out_shape=jax.ShapeDtypeStruct((B, T, C), qkv.dtype),
        grid=(B,),
        in_specs=[pl.BlockSpec((1, T, C3), lambda b: (b, 0, 0))],
        out_specs=pl.BlockSpec((1, T, C), lambda b: (b, 0, 0)),
        compiler_params=pltpu.CompilerParams(dimension_semantics=("parallel",)),
    )(qkv)


# ----------------------------------------------------------------------------
# Model (composition of Pallas kernels)
# ----------------------------------------------------------------------------

def transformer_block(x, p, cfg):
    B, T, C = x.shape
    H = cfg["att_head_num"]
    assert C % H == 0

    # x = LN1(x)   (LN output is also the residual base, per the reference)
    x = layernorm(x, p["ln1_g"], p["ln1_b"])
    x2 = x.reshape(B * T, C)

    # fused Q/K/V projection: single (C, 3C) matmul, heads head-major along N
    qkv = linear(x2, p["wqkv_t"]).reshape(B, T, 3 * C)

    # causal multi-head attention (dropout = identity in eval)
    # NOTE: the reference scales affinities by n_embed ** -0.5 (C), not hs**-0.5
    att = causal_attention(qkv, H, float(C) ** -0.5)

    # heads projection + bias + residual, fused in one kernel epilogue
    x = linear(att.reshape(B * T, C), p["proj_w_t"], p["proj_b"],
               residual=x2).reshape(B, T, C)

    # x = LN2(x)
    x = layernorm(x, p["ln2_g"], p["ln2_b"])
    x2 = x.reshape(B * T, C)

    # feed-forward: ff1 (+bias, ReLU) then ff2 (+bias, +residual)
    h = linear(x2, p["ff1_w_t"], p["ff1_b"], relu=True)
    x = linear(h, p["ff2_w_t"], p["ff2_b"], residual=x2).reshape(B, T, C)
    return x


def only_decoder_forward(params, token_idx, cfg, targets=None):
    B, T = token_idx.shape
    C = cfg["n_embed"]
    V = cfg["vocab_size"]

    tok_emb = params["tok_emb"][token_idx]          # (B, T, C) gather (glue)
    pos_emb = params["pos_emb"][:T]                 # (T, C)
    x = tok_emb + pos_emb[None, :, :]

    for blk in params["blocks"]:
        x = transformer_block(x, blk, cfg)

    # Sequential's trailing LayerNorm + forward()'s extra LayerNorm, fused
    # into one kernel call (one HBM round trip instead of two).
    x = layernorm(x, params["seq_ln_g"], params["seq_ln_b"],
                  params["ln_g"], params["ln_b"])

    logits = linear(x.reshape(B * T, C), params["lin_w_t"], params["lin_b"])
    logits = logits.reshape(B, T, V)

    loss = None
    # TODO(synk): cross-entropy loss branch (targets is not None) not implemented.
    return logits, loss


# ----------------------------------------------------------------------------
# Deterministic parameter initialization (weights stored pre-transposed)
# ----------------------------------------------------------------------------

def init_params(key, cfg):
    C = cfg["n_embed"]
    V = cfg["vocab_size"]
    L = cfg["context_length"]

    def nrm(k, shape, scale=0.02):
        return (scale * jax.random.normal(k, shape)).astype(jnp.float32)

    keys = jax.random.split(key, 4 + cfg["blocks_num"])
    params = {
        "tok_emb": nrm(keys[0], (V, C)),
        "pos_emb": nrm(keys[1], (L, C)),
        "lin_w_t": nrm(keys[2], (V, C)).T,          # pre-transposed (C, V)
        "lin_b": jnp.zeros((V,), jnp.float32),
        "seq_ln_g": jnp.ones((C,), jnp.float32),
        "seq_ln_b": jnp.zeros((C,), jnp.float32),
        "ln_g": jnp.ones((C,), jnp.float32),
        "ln_b": jnp.zeros((C,), jnp.float32),
        "blocks": [],
    }
    for bi in range(cfg["blocks_num"]):
        bk = jax.random.split(keys[4 + bi], 8)
        # per-head q/k/v weights concatenated head-major (PyTorch layout
        # (out, in)), fused + pre-transposed to one (C, 3C) matrix.
        wq = nrm(bk[0], (C, C))
        wk = nrm(bk[1], (C, C))
        wv = nrm(bk[2], (C, C))
        params["blocks"].append({
            "ln1_g": jnp.ones((C,), jnp.float32),
            "ln1_b": jnp.zeros((C,), jnp.float32),
            "ln2_g": jnp.ones((C,), jnp.float32),
            "ln2_b": jnp.zeros((C,), jnp.float32),
            "wqkv_t": jnp.concatenate([wq.T, wk.T, wv.T], axis=1),   # (C, 3C)
            "proj_w_t": nrm(bk[3], (C, C)).T,                        # (C, C)
            "proj_b": jnp.zeros((C,), jnp.float32),
            "ff1_w_t": nrm(bk[4], (4 * C, C)).T,                     # (C, 4C)
            "ff1_b": jnp.zeros((4 * C,), jnp.float32),
            "ff2_w_t": nrm(bk[5], (C, 4 * C)).T,                     # (4C, C)
            "ff2_b": jnp.zeros((C,), jnp.float32),
        })
    return params


# ----------------------------------------------------------------------------

if __name__ == "__main__":
    cfg = dict(
        vocab_size=64,
        n_embed=32,
        context_length=8,
        att_head_num=4,
        blocks_num=2,
        dropout=0.0,
    )
    B, T = 2, cfg["context_length"]

    key = jax.random.PRNGKey(0)
    k_tok, k_par = jax.random.split(key)
    token_idx = jax.random.randint(k_tok, (B, T), 0, cfg["vocab_size"],
                                   dtype=jnp.int32)
    params = init_params(k_par, cfg)

    logits, loss = only_decoder_forward(params, token_idx, cfg)
    logits = jax.block_until_ready(logits)

    assert logits.shape == (B, T, cfg["vocab_size"]), logits.shape
    assert loss is None
    assert bool(jnp.all(jnp.isfinite(logits)))
    print("KERNEL_OK")
</pallas_src>

<mosaic_0001>
module attributes {stable_mosaic.version = 11 : i64} {
  func.func @_ln_kernel(%arg0: i32, %arg1: memref<16x32xf32, #tpu.memory_space<vmem>>, %arg2: memref<1x32xf32, #tpu.memory_space<vmem>>, %arg3: memref<1x32xf32, #tpu.memory_space<vmem>>, %arg4: memref<16x32xf32, #tpu.memory_space<vmem>>) attributes {dimension_semantics = [#tpu.dimension_semantics<parallel>], iteration_bounds = array<i64: 1>, scalar_prefetch = 0 : i64, scratch_operands = 0 : i64, tpu.core_type = #tpu.core_type<tc>, window_params = [{transform_indices = @transform_0, window_bounds = array<i64: 16, 32>}, {pipeline_mode = #tpu.pipeline_mode<synchronous>, transform_indices = @transform_1, window_bounds = array<i64: 1, 32>}, {pipeline_mode = #tpu.pipeline_mode<synchronous>, transform_indices = @transform_2, window_bounds = array<i64: 1, 32>}, {transform_indices = @transform_3, window_bounds = array<i64: 16, 32>}]} {
    %c0 = arith.constant 0 : index
    %c0_0 = arith.constant 0 : index
    %0 = vector.load %arg1[%c0, %c0_0] : memref<16x32xf32, #tpu.memory_space<vmem>>, vector<16x32xf32>
    %c0_1 = arith.constant 0 : index
    %c0_2 = arith.constant 0 : index
    %1 = vector.load %arg2[%c0_1, %c0_2] : memref<1x32xf32, #tpu.memory_space<vmem>>, vector<1x32xf32>
    %c0_3 = arith.constant 0 : index
    %c0_4 = arith.constant 0 : index
    %2 = vector.load %arg3[%c0_3, %c0_4] : memref<1x32xf32, #tpu.memory_space<vmem>>, vector<1x32xf32>
    %cst = arith.constant dense<0.000000e+00> : vector<16xf32>
    %3 = vector.multi_reduction <add>, %0, %cst [1] : vector<16x32xf32> to vector<16xf32>
    %4 = vector.shape_cast %3 : vector<16xf32> to vector<16x1xf32>
    %cst_5 = arith.constant 3.200000e+01 : f32
    %5 = vector.broadcast %cst_5 : f32 to vector<16x1xf32>
    %6 = arith.divf %4, %5 : vector<16x1xf32>
    %7 = vector.broadcast %6 : vector<16x1xf32> to vector<16x32xf32>
    %8 = arith.subf %0, %7 : vector<16x32xf32>
    %9 = arith.mulf %8, %8 : vector<16x32xf32>
    %cst_6 = arith.constant dense<0.000000e+00> : vector<16xf32>
    %10 = vector.multi_reduction <add>, %9, %cst_6 [1] : vector<16x32xf32> to vector<16xf32>
    %11 = vector.shape_cast %10 : vector<16xf32> to vector<16x1xf32>
    %cst_7 = arith.constant 3.200000e+01 : f32
    %12 = vector.broadcast %cst_7 : f32 to vector<16x1xf32>
    %13 = arith.divf %11, %12 : vector<16x1xf32>
    %14 = vector.broadcast %6 : vector<16x1xf32> to vector<16x32xf32>
    %15 = arith.subf %0, %14 : vector<16x32xf32>
    %cst_8 = arith.constant 9.99999974E-6 : f32
    %16 = vector.broadcast %cst_8 : f32 to vector<16x1xf32>
    %17 = arith.addf %13, %16 : vector<16x1xf32>
    %18 = math.rsqrt %17 : vector<16x1xf32>
    %19 = vector.broadcast %18 : vector<16x1xf32> to vector<16x32xf32>
    %20 = arith.mulf %15, %19 : vector<16x32xf32>
    %21 = vector.broadcast %1 : vector<1x32xf32> to vector<16x32xf32>
    %22 = arith.mulf %20, %21 : vector<16x32xf32>
    %23 = vector.broadcast %2 : vector<1x32xf32> to vector<16x32xf32>
    %24 = arith.addf %22, %23 : vector<16x32xf32>
    %c0_9 = arith.constant 0 : index
    %c0_10 = arith.constant 0 : index
    %25 = vector.load %arg4[%c0_9, %c0_10] : memref<16x32xf32, #tpu.memory_space<vmem>>, vector<16x32xf32>
    tpu.vector_store %arg4[%c0_9, %c0_10], %24 {strides = array<i32>} : memref<16x32xf32, #tpu.memory_space<vmem>>, vector<16x32xf32>,
    return
  }
  func.func @transform_0(%arg0: i32) -> (i32, i32) {
    %c0_i32 = arith.constant 0 : i32
    %c0_i32_0 = arith.constant 0 : i32
    return %arg0, %c0_i32 : i32, i32
  }
  func.func @transform_1(%arg0: i32) -> (i32, i32) {
    %c0_i32 = arith.constant 0 : i32
    %c0_i32_0 = arith.constant 0 : i32
    %c0_i32_1 = arith.constant 0 : i32
    return %c0_i32, %c0_i32_0 : i32, i32
  }
  func.func @transform_2(%arg0: i32) -> (i32, i32) {
    %c0_i32 = arith.constant 0 : i32
    %c0_i32_0 = arith.constant 0 : i32
    %c0_i32_1 = arith.constant 0 : i32
    return %c0_i32, %c0_i32_0 : i32, i32
  }
  func.func @transform_3(%arg0: i32) -> (i32, i32) {
    %c0_i32 = arith.constant 0 : i32
    %c0_i32_0 = arith.constant 0 : i32
    return %arg0, %c0_i32 : i32, i32
  }
}

</mosaic_0001>

<bundles_post_ra>
// kernel: tpu_custom_call.1
= control target key start
LH: loop header
LB: loop body
LE: loop exit
PB: predicated region body
PF: predicated region fallthrough
CT: control target
= control target key end

     0   :  { %8 = vsyncpa [#allocation3], 0  ;;  %s220_s0 = inlined_call_operand.hbm [shape: f32[16,32], index: 0, kind: input, shape index: {}]   ;;  %s221_s1 = inlined_call_operand.vmem [shape: f32[1,32], index: 1, kind: input, shape index: {}]   ;;  %s222_s2 = inlined_call_operand.vmem [shape: f32[1,32], index: 2, kind: input, shape index: {}]   ;;  %s223_s3 = inlined_call_operand.hbm [shape: f32[16,32], index: 3, kind: output, shape index: {}]  }
   0x1   :  { %9 = vsyncpa [#allocation4], 0  ;;  %s154_s12 = smov [#allocation2]   ;;  %s106_s16 = scalar_lea.hbm %s220_s0, 256 }
   0x2   :  { %s15_s13 = sshll.u32 %s154_s12, 4  ;;  %p107_p0 = scmp.ne.s32.totalorder %s220_s0, %s106_s16  ;;  %s16_s13 = int_to_ptr.vmem [resolvable:$true] %s15_s13 }
   0x3   :  { %p110_p1 = scmp.lt.u32.totalorder %s106_s16, %s220_s0 }
   0x5   :  { %p112_p2 = pnand %p110_p1, %p107_p0 }
   0x7   :  { %115 = shalt.err (!%p112_p2)
}
   0x8   :  { %s116_s21 = scalar_lea.vmem %s16_s13, 256  ;;  %p121_p4 = scmp.lt.s32.totalorder %s16_s13, %s16_s13 }
   0x9   :  { %p117_p3 = scmp.ne.s32.totalorder %s16_s13, %s116_s21  ;;  %p122_p5 = scmp.lt.s32.totalorder %s116_s21, %s116_s21 }
   0xb   :  { %p123_p6 = por %p122_p5, %p121_p4 }
   0xd   :  { %p124_p7 = pnand %p123_p6, %p117_p3 }
   0xf   :  { %127 = shalt.err (!%p124_p7)
}
  0x10   :  { %s155_s22 = smov 128   ;;  %s156_s23 = smov 8  }
  0x11   :  { %21 = dma.hbm_to_vmem [thread:$0]  %s220_s0, 256, %s16_s13, [#allocation3], %s155_s22, %s155_s22, %s156_s23  }
  0x12   :  { %150 = dma.done.wait [#allocation3], 256  }
  0x13   :  { %151 = vsyncadd [#allocation3], 4294967040  ;;  %vm33_vm0 = vcmask 261120   ;;  %v29_v0 = vld [vmem:[#allocation2] sm:$0xff]  ;;  %v30_v1 = vld [vmem:[#allocation2 + $0x8] sm:$0xff]  ;;  %s157_s29 = smov [#allocation5]  }
  0x14   :  { %v34_v2 = vsel %vm33_vm0, %v29_v0, 0.0  ;;  %v37_v3 = vsel %vm33_vm0, %v30_v1, 0.0  ;;  %v96_v21 = vld [vmem:[%s221_s1] ss:$0 sm:$0xff]  ;;  %s84_s30 = sshll.u32 %s157_s29, 4  ;;  %s85_s30 = int_to_ptr.vmem [resolvable:$true] %s84_s30 }
  0x15   :  { %35 = vadd.xlane.f32.xlu0 %v34_v2  ;;  %v97_v23 = vld [vmem:[%s222_s2] ss:$0 sm:$0xff]  ;;  %s128_s4 = scalar_lea.vmem %s85_s30, 256  ;;  %p133_p9 = scmp.lt.s32.totalorder %s85_s30, %s85_s30 }
  0x16   :  { %p129_p8 = scmp.ne.s32.totalorder %s85_s30, %s128_s4  ;;  %p134_p10 = scmp.lt.s32.totalorder %s128_s4, %s128_s4 }
  0x18   :  { %p135_p11 = por %p134_p10, %p133_p9 }
  0x19   :  { %38 = vadd.xlane.f32.xlu0 %v37_v3 }
  0x1a   :  { %p136_p12 = pnand %p135_p11, %p129_p8 }
  0xa2   :  { %v36_v4 = vpop.xlane.xlu0 %35 }
  0xa3   :  { %v41_v5 = vmul.f32 0.03125, %v36_v4 }
  0xa5   :  { %v43_v6 = vsub.f32 %v29_v0, %v41_v5 }
  0xa6   :  { %v39_v7 = vpop.xlane.xlu0 %38 }
  0xa7   :  { %v42_v8 = vmul.f32 0.03125, %v39_v7  ;;  %v45_v9 = vmul.f32 %v43_v6, %v43_v6 }
  0xa9   :  { %v44_v10 = vsub.f32 %v30_v1, %v42_v8  ;;  %v47_v11 = vsel %vm33_vm0, %v45_v9, 0.0 }
  0xaa   :  { %48 = vadd.xlane.f32.xlu1 %v47_v11 }
  0xab   :  { %v46_v12 = vmul.f32 %v44_v10, %v44_v10 }
  0xad   :  { %v50_v13 = vsel %vm33_vm0, %v46_v12, 0.0 }
  0xae   :  { %51 = vadd.xlane.f32.xlu1 %v50_v13 }
 0x137   :  { %v49_v14 = vpop.xlane.xlu1 %48 }
 0x138   :  { %v53_v15 = vmul.f32 0.03125, %v49_v14 }
 0x13a   :  { %v55_v16 = vadd.f32 1e-05, %v53_v15 }
 0x13b   :  { %v52_v17 = vpop.xlane.xlu1 %51 }
 0x13c   :  { %102 = vrsqrt.f32 %v55_v16  ;;  %v54_v18 = vmul.f32 0.03125, %v52_v17 }
 0x13e   :  { %v56_v19 = vadd.f32 1e-05, %v54_v18 }
 0x140   :  { %104 = vrsqrt.f32 %v56_v19 }
 0x146   :  { %v103_v20 = vpop.eup %102 }
 0x147   :  { %v59_v22 = vmul.f32 %v103_v20, %v43_v6 }
 0x149   :  { %v67_v24 = vmul.f32 %v96_v21, %v59_v22 }
 0x14a   :  { %v105_v25 = vpop.eup %104 }
 0x14b   :  { %v60_v26 = vmul.f32 %v105_v25, %v44_v10  ;;  %v75_v27 = vadd.f32 %v97_v23, %v67_v24 }
 0x14d   :  { %v68_v28 = vmul.f32 %v96_v21, %v60_v26  ;;  %77 = vst.msk [vmem:[#allocation5] sm:$0xff] %vm33_vm0, %v75_v27 }
 0x14f   :  { %v76_v29 = vadd.f32 %v97_v23, %v68_v28 }
 0x151   :  { %78 = vst.msk [vmem:[#allocation5 + $0x8] sm:$0xff] %vm33_vm0, %v76_v29 }
 0x152   :  { %139 = shalt.err (!%p136_p12)
}
 0x153   :  { %s140_s5 = scalar_lea.hbm %s223_s3, 256 }
 0x154   :  { %p141_p13 = scmp.ne.s32.totalorder %s223_s3, %s140_s5  ;;  %p144_p0 = scmp.lt.u32.totalorder %s140_s5, %s223_s3 }
 0x156   :  { %p146_p1 = pnand %p144_p0, %p141_p13 }
 0x158   :  { %149 = shalt.err (!%p146_p1)
}
 0x159   :  { %90 = dma.vmem_to_hbm [thread:$0]  %s85_s30, 256, %s223_s3, [#allocation4], %s155_s22, %s155_s22, %s156_s23  }
 0x15a   :  { %152 = dma.done.wait [#allocation4], 256  }
 0x15b   :  { %153 = vsyncadd [#allocation4], 4294967040 }
 0x15c   :  { %94 = vsyncpa [#allocation3], 1 }
 0x15d   :  { %95 = vsyncpa [#allocation4], 1 }

</bundles_post_ra>
